<compile_context>
chip_gen: v7x
topology: tpu7x:2x2x1
jax: 0.10.0
libtpu: 0.0.40
codegen_flags: <defaults>
</compile_context>

<pallas_src>
import jax
import jax.numpy as jnp
from jax.experimental import pallas as pl
from jax.experimental.pallas import tpu as pltpu

_LANE = 128     # vreg lane width


def _round_up(x, m):
    return ((x + m - 1) // m) * m


def _link_predictor_kernel(zs_ref, zd_ref, ws_ref, wd_ref, b_ref,
                           wf_ref, bf_ref, out_ref):
    """Transposed forward pass; batch N lives on the lane axis.

    zs_ref, zd_ref : (Cp, tile_n) bf16   transposed activations
    ws_ref, wd_ref : (Cp, Cp)     bf16   weights in torch (out, in) layout
    b_ref          : (Cp, 1)      f32    fused b_src + b_dst column
    wf_ref         : (Cp, 1)      f32    W_final as a column
    bf_ref         : (1,)         f32    b_final (SMEM scalar)
    out_ref        : (1, tile_n)  f32    lane-dense output row
    """
    h = jnp.dot(ws_ref[...], zs_ref[...], preferred_element_type=jnp.float32)
    h = h + jnp.dot(wd_ref[...], zd_ref[...], preferred_element_type=jnp.float32)
    h = jnp.maximum(h + b_ref[...], 0.0)                    # ReLU, (Cp, tile_n) f32
    # Final Linear(C -> 1): per-edge dot product = VPU mul + sublane reduce.
    out = jnp.sum(h * wf_ref[...], axis=0, keepdims=True)   # (1, tile_n) f32
    out_ref[...] = (out + bf_ref[0]).astype(out_ref.dtype)


def prepare_params(params, *, compute_dtype=jnp.bfloat16):
    """One-time parameter prep (do NOT redo per inference call):
    pad C up to a multiple of 128, cast the two hidden weights to the compute
    dtype (kept in torch (out,in) layout - no transpose needed for the
    transposed kernel), fuse the two hidden biases into one column, and keep
    W_final / b_final in f32."""
    c = params["w_src"].shape[0]
    cp = _round_up(c, _LANE)

    def pad2(w):   # (C, C) -> (Cp, Cp), zero-padded
        return jnp.pad(w, ((0, cp - w.shape[0]), (0, cp - w.shape[1])))

    ws = pad2(params["w_src"]).astype(compute_dtype)                  # (Cp, Cp)
    wd = pad2(params["w_dst"]).astype(compute_dtype)                  # (Cp, Cp)

    b_hidden = (params["b_src"] + params["b_dst"]).astype(jnp.float32)
    b_hidden = jnp.pad(b_hidden, (0, cp - c)).reshape(cp, 1)          # (Cp, 1)

    wf_col = jnp.pad(params["w_final"].reshape(-1).astype(jnp.float32),
                     (0, cp - c)).reshape(cp, 1)                      # (Cp, 1)
    b_final = params["b_final"].astype(jnp.float32).reshape(1)        # (1,)

    return {
        "in_channels": c,
        "padded_channels": cp,
        "compute_dtype": compute_dtype,
        "ws": ws, "wd": wd,
        "b_hidden": b_hidden, "wf_col": wf_col, "b_final": b_final,
    }


def link_predictor(z_src, z_dst, prepped, *, tile_n=512):
    """Pallas-call wrapper. z_src, z_dst: [N, C] float32. Returns [N, 1] f32."""
    n, c = z_src.shape
    assert z_dst.shape == (n, c)
    assert c == prepped["in_channels"]
    cp = prepped["padded_channels"]
    cdt = prepped["compute_dtype"]

    # Batch tile = lane dim of the transposed blocks: multiple of 128, as big
    # as requested, but halved (when N allows) so the "parallel" grid axis
    # keeps >= 2 steps for v7x's two TensorCores.
    tile_n = max(_LANE, _round_up(min(tile_n, _round_up(n, _LANE)), _LANE))
    while pl.cdiv(n, tile_n) < 2 and tile_n > _LANE:
        tile_n = max(_LANE, _round_up(tile_n // 2, _LANE))
    n_pad = _round_up(n, tile_n)
    grid = (n_pad // tile_n,)

    # Pad + cast + transpose (fuses into the copy we already had to make).
    zs_t = jnp.pad(z_src, ((0, n_pad - n), (0, cp - c))).astype(cdt).T  # (Cp, n_pad)
    zd_t = jnp.pad(z_dst, ((0, n_pad - n), (0, cp - c))).astype(cdt).T  # (Cp, n_pad)

    z_spec = pl.BlockSpec((cp, tile_n), lambda i: (0, i))
    w_spec = pl.BlockSpec((cp, cp), lambda i: (0, 0))        # VMEM-resident weights
    col_spec = pl.BlockSpec((cp, 1), lambda i: (0, 0))
    smem_spec = pl.BlockSpec(memory_space=pltpu.MemorySpace.SMEM)
    out_spec = pl.BlockSpec((1, tile_n), lambda i: (0, i))

    # VMEM budget: resident weights + double-buffered activation/output tiles.
    itemsize = jnp.dtype(cdt).itemsize
    vmem_est = (2 * cp * cp * itemsize             # resident hidden weights
                + 2 * cp * 4                        # bias + W_final columns (f32)
                + 2 * 2 * cp * tile_n * itemsize    # double-buffered activations
                + 2 * tile_n * 4)                   # double-buffered output row
    compiler_kwargs = {"dimension_semantics": ("parallel",)}
    if vmem_est > 12 * (1 << 20):
        compiler_kwargs["vmem_limit_bytes"] = min(2 * vmem_est, 64 * (1 << 20))
    # TODO(synk): for very large C (resident 2*Cp^2 bf16 weights near the VMEM
    # cap, esp. v7x's 64 MiB), add a K grid axis marked "arbitrary" with an
    # f32 accumulator scratch so weight tiles stream instead of staying resident.

    out_row = pl.pallas_call(
        _link_predictor_kernel,
        out_shape=jax.ShapeDtypeStruct((1, n_pad), jnp.float32),
        grid_spec=pltpu.PrefetchScalarGridSpec(
            num_scalar_prefetch=0,
            grid=grid,
            in_specs=[z_spec, z_spec, w_spec, w_spec,
                      col_spec, col_spec, smem_spec],
            out_specs=out_spec,
        ),
        compiler_params=pltpu.CompilerParams(**compiler_kwargs),
    )(zs_t, zd_t, prepped["ws"], prepped["wd"], prepped["b_hidden"],
      prepped["wf_col"], prepped["b_final"])

    # Row 0 holds all edges; only the first n lanes carry real data.
    return out_row[0, :n].reshape(n, 1)


def init_params(key, in_channels):
    """Deterministic init mimicking torch.nn.Linear default (uniform +/- 1/sqrt(fan_in))."""
    ks = jax.random.split(key, 6)
    bound = 1.0 / jnp.sqrt(jnp.float32(in_channels))
    u = lambda k, shape: jax.random.uniform(k, shape, jnp.float32, -bound, bound)
    return {
        "w_src": u(ks[0], (in_channels, in_channels)),   # (out, in) like torch
        "b_src": u(ks[1], (in_channels,)),
        "w_dst": u(ks[2], (in_channels, in_channels)),
        "b_dst": u(ks[3], (in_channels,)),
        "w_final": u(ks[4], (1, in_channels)),
        "b_final": u(ks[5], (1,)),
    }


def link_predictor_ref(z_src, z_dst, params):
    h = z_src @ params["w_src"].T + params["b_src"]
    h = h + z_dst @ params["w_dst"].T + params["b_dst"]
    h = jnp.maximum(h, 0.0)
    return h @ params["w_final"].T + params["b_final"]


if __name__ == "__main__":
    N, C = 8, 32
    key = jax.random.PRNGKey(0)
    k_params, k_src, k_dst = jax.random.split(key, 3)

    params = init_params(k_params, C)
    z_src = jax.random.normal(k_src, (N, C), jnp.float32)
    z_dst = jax.random.normal(k_dst, (N, C), jnp.float32)

    prepped = prepare_params(params, compute_dtype=jnp.bfloat16)
    out = jax.block_until_ready(link_predictor(z_src, z_dst, prepped))

    ref = link_predictor_ref(z_src, z_dst, params)
    assert out.shape == (N, 1)
    # bf16 weights/activations with f32 MXU accumulation -> loosened tolerance.
    assert jnp.allclose(out, ref, atol=5e-2, rtol=5e-2), "mismatch vs reference"

    print("KERNEL_OK")
</pallas_src>

<mosaic_0001>
module attributes {stable_mosaic.version = 11 : i64} {
  func.func @_link_predictor_kernel(%arg0: i32, %arg1: memref<128x128xbf16, #tpu.memory_space<vmem>>, %arg2: memref<128x128xbf16, #tpu.memory_space<vmem>>, %arg3: memref<128x128xbf16, #tpu.memory_space<vmem>>, %arg4: memref<128x128xbf16, #tpu.memory_space<vmem>>, %arg5: memref<128x1xf32, #tpu.memory_space<vmem>>, %arg6: memref<128x1xf32, #tpu.memory_space<vmem>>, %arg7: memref<1xf32, #tpu.memory_space<smem>>, %arg8: memref<1x128xf32, #tpu.memory_space<vmem>>) attributes {dimension_semantics = [#tpu.dimension_semantics<parallel>], iteration_bounds = array<i64: 1>, scalar_prefetch = 0 : i64, scratch_operands = 0 : i64, tpu.core_type = #tpu.core_type<tc>, window_params = [{transform_indices = @transform_0, window_bounds = array<i64: 128, 128>}, {transform_indices = @transform_1, window_bounds = array<i64: 128, 128>}, {pipeline_mode = #tpu.pipeline_mode<synchronous>, transform_indices = @transform_2, window_bounds = array<i64: 128, 128>}, {pipeline_mode = #tpu.pipeline_mode<synchronous>, transform_indices = @transform_3, window_bounds = array<i64: 128, 128>}, {pipeline_mode = #tpu.pipeline_mode<synchronous>, transform_indices = @transform_4, window_bounds = array<i64: 128, 1>}, {pipeline_mode = #tpu.pipeline_mode<synchronous>, transform_indices = @transform_5, window_bounds = array<i64: 128, 1>}, {transform_indices = @transform_6, window_bounds = array<i64: 1>}, {transform_indices = @transform_7, window_bounds = array<i64: 1, 128>}]} {
    %c0 = arith.constant 0 : index
    %c0_0 = arith.constant 0 : index
    %0 = vector.load %arg3[%c0, %c0_0] : memref<128x128xbf16, #tpu.memory_space<vmem>>, vector<128x128xbf16>
    %c0_1 = arith.constant 0 : index
    %c0_2 = arith.constant 0 : index
    %1 = vector.load %arg1[%c0_1, %c0_2] : memref<128x128xbf16, #tpu.memory_space<vmem>>, vector<128x128xbf16>
    %cst = arith.constant dense<0.000000e+00> : vector<128x128xf32>
    %2 = tpu.matmul %0, %1, %cst {dimension_numbers = #tpu.dot_dimension_numbers<[1], [0], [0], [1], [0, 0, 1, 1], [], []>} : vector<128x128xbf16>, vector<128x128xbf16>, vector<128x128xf32> -> vector<128x128xf32>
    %c0_3 = arith.constant 0 : index
    %c0_4 = arith.constant 0 : index
    %3 = vector.load %arg4[%c0_3, %c0_4] : memref<128x128xbf16, #tpu.memory_space<vmem>>, vector<128x128xbf16>
    %c0_5 = arith.constant 0 : index
    %c0_6 = arith.constant 0 : index
    %4 = vector.load %arg2[%c0_5, %c0_6] : memref<128x128xbf16, #tpu.memory_space<vmem>>, vector<128x128xbf16>
    %cst_7 = arith.constant dense<0.000000e+00> : vector<128x128xf32>
    %5 = tpu.matmul %3, %4, %cst_7 {dimension_numbers = #tpu.dot_dimension_numbers<[1], [0], [0], [1], [0, 0, 1, 1], [], []>} : vector<128x128xbf16>, vector<128x128xbf16>, vector<128x128xf32> -> vector<128x128xf32>
    %6 = arith.addf %2, %5 : vector<128x128xf32>
    %c0_8 = arith.constant 0 : index
    %c0_9 = arith.constant 0 : index
    %7 = vector.load %arg5[%c0_8, %c0_9] : memref<128x1xf32, #tpu.memory_space<vmem>>, vector<128x1xf32>
    %8 = vector.broadcast %7 : vector<128x1xf32> to vector<128x128xf32>
    %9 = arith.addf %6, %8 : vector<128x128xf32>
    %cst_10 = arith.constant 0.000000e+00 : f32
    %10 = vector.broadcast %cst_10 : f32 to vector<128x128xf32>
    %11 = arith.maximumf %9, %10 : vector<128x128xf32>
    %c0_11 = arith.constant 0 : index
    %c0_12 = arith.constant 0 : index
    %12 = vector.load %arg6[%c0_11, %c0_12] : memref<128x1xf32, #tpu.memory_space<vmem>>, vector<128x1xf32>
    %13 = vector.broadcast %12 : vector<128x1xf32> to vector<128x128xf32>
    %14 = arith.mulf %11, %13 : vector<128x128xf32>
    %cst_13 = arith.constant dense<0.000000e+00> : vector<128xf32>
    %15 = vector.multi_reduction <add>, %14, %cst_13 [0] : vector<128x128xf32> to vector<128xf32>
    %16 = vector.shape_cast %15 : vector<128xf32> to vector<1x128xf32>
    %c0_14 = arith.constant 0 : index
    %17 = memref.load %arg7[%c0_14] : memref<1xf32, #tpu.memory_space<smem>>
    %18 = vector.broadcast %17 : f32 to vector<1x128xf32>
    %19 = arith.addf %16, %18 : vector<1x128xf32>
    %c0_15 = arith.constant 0 : index
    %c0_16 = arith.constant 0 : index
    %20 = vector.load %arg8[%c0_15, %c0_16] : memref<1x128xf32, #tpu.memory_space<vmem>>, vector<1x128xf32>
    tpu.vector_store %arg8[%c0_15, %c0_16], %19 {strides = array<i32>} : memref<1x128xf32, #tpu.memory_space<vmem>>, vector<1x128xf32>,
    return
  }
  func.func @transform_0(%arg0: i32) -> (i32, i32) {
    %c0_i32 = arith.constant 0 : i32
    %c0_i32_0 = arith.constant 0 : i32
    return %c0_i32, %arg0 : i32, i32
  }
  func.func @transform_1(%arg0: i32) -> (i32, i32) {
    %c0_i32 = arith.constant 0 : i32
    %c0_i32_0 = arith.constant 0 : i32
    return %c0_i32, %arg0 : i32, i32
  }
  func.func @transform_2(%arg0: i32) -> (i32, i32) {
    %c0_i32 = arith.constant 0 : i32
    %c0_i32_0 = arith.constant 0 : i32
    %c0_i32_1 = arith.constant 0 : i32
    return %c0_i32, %c0_i32_0 : i32, i32
  }
  func.func @transform_3(%arg0: i32) -> (i32, i32) {
    %c0_i32 = arith.constant 0 : i32
    %c0_i32_0 = arith.constant 0 : i32
    %c0_i32_1 = arith.constant 0 : i32
    return %c0_i32, %c0_i32_0 : i32, i32
  }
  func.func @transform_4(%arg0: i32) -> (i32, i32) {
    %c0_i32 = arith.constant 0 : i32
    %c0_i32_0 = arith.constant 0 : i32
    %c0_i32_1 = arith.constant 0 : i32
    return %c0_i32, %c0_i32_0 : i32, i32
  }
  func.func @transform_5(%arg0: i32) -> (i32, i32) {
    %c0_i32 = arith.constant 0 : i32
    %c0_i32_0 = arith.constant 0 : i32
    %c0_i32_1 = arith.constant 0 : i32
    return %c0_i32, %c0_i32_0 : i32, i32
  }
  func.func @transform_6(%arg0: i32) -> i32 {
    %c0_i32 = arith.constant 0 : i32
    %c0_i32_0 = arith.constant 0 : i32
    return %c0_i32 : i32
  }
  func.func @transform_7(%arg0: i32) -> (i32, i32) {
    %c0_i32 = arith.constant 0 : i32
    %c0_i32_0 = arith.constant 0 : i32
    return %c0_i32, %arg0 : i32, i32
  }
}

</mosaic_0001>

<bundles_post_ra>
// kernel: tpu_custom_call.1
= control target key start
LH: loop header
LB: loop body
LE: loop exit
PB: predicated region body
PF: predicated region fallthrough
CT: control target
= control target key end

     0   :  { %v962_v2 = vmov 0   ;;  %s1247_s0 = inlined_call_operand.vmem [shape: bf16[128,128], index: 0, kind: input, shape index: {}]   ;;  %s1248_s1 = inlined_call_operand.vmem [shape: bf16[128,128], index: 1, kind: input, shape index: {}]   ;;  %s1249_s2 = inlined_call_operand.vmem [shape: bf16[128,128], index: 2, kind: input, shape index: {}]   ;;  %s1250_s3 = inlined_call_operand.vmem [shape: bf16[128,128], index: 3, kind: input, shape index: {}]   ;;  %s1251_s4 = inlined_call_operand.vmem [shape: f32[128,1], index: 4, kind: input, shape index: {}]   ;;  %s1252_s5 = inlined_call_operand.vmem [shape: f32[128,1], index: 5, kind: input, shape index: {}]   ;;  %s1253_s6 = inlined_call_operand.<no memory space> [shape: f32[1], index: 6, kind: input, shape index: {}]   ;;  %s1254_s7 = inlined_call_operand.hbm [shape: f32[1,128], index: 7, kind: output, shape index: {}]  }
   0x1   :  { %v906_v0 = vld [vmem:[%s1248_s1] sm:$0xff]   ;;  %904 = vset.pattern.permute.xlu0 %v962_v2  ;;  %905 = vset.pattern.permute.xlu1 %v962_v2  ;;  %v908_v3 = vld [vmem:[%s1248_s1 + $0x8] sm:$0xff]   ;;  %v910_v5 = vld [vmem:[%s1248_s1 + $0x10] sm:$0xff]  }
   0x2   :  { %v907_v1 = vld [vmem:[%s1247_s0] sm:$0xff]   ;;  %822 = vmatprep.subr.bf16.mxu1 %v906_v0  ;;  %v909_v4 = vld [vmem:[%s1247_s0 + $0x8] sm:$0xff]   ;;  %v911_v6 = vld [vmem:[%s1247_s0 + $0x10] sm:$0xff]  }
   0x3   :  { %854 = vmatprep.subr.bf16.mxu0 %v907_v1  ;;  %823 = vmatpush3.bf16.msra.mxu1 %v906_v0  ;;  %v912_v7 = vld [vmem:[%s1248_s1 + $0x18] sm:$0xff]   ;;  %v914_v9 = vld [vmem:[%s1248_s1 + $0x20] sm:$0xff]   ;;  %v916_v11 = vld [vmem:[%s1248_s1 + $0x28] sm:$0xff]  }
   0x4   :  { %855 = vmatpush3.bf16.msra.mxu0 %v907_v1  ;;  %824 = vmatprep.subr.bf16.mxu1 %v908_v3  ;;  %v913_v8 = vld [vmem:[%s1247_s0 + $0x18] sm:$0xff]   ;;  %v915_v10 = vld [vmem:[%s1247_s0 + $0x20] sm:$0xff]   ;;  %v917_v12 = vld [vmem:[%s1247_s0 + $0x28] sm:$0xff]  }
   0x5   :  { %856 = vmatprep.subr.bf16.mxu0 %v909_v4  ;;  %v479_v13 = vld [vmem:[%s1251_s4] sm:$0xff]  ;;  %v918_v16 = vld [vmem:[%s1248_s1 + $0x30] sm:$0xff]   ;;  %v480_v18 = vld [vmem:[%s1251_s4 + $0x8] sm:$0xff] }
   0x6   :  { %497 = vperm.xlu0 %904, %v479_v13   ;;  %v922_v14 = vld [vmem:[%s1250_s3] sm:$0xff]   ;;  %v481_v17 = vld [vmem:[%s1251_s4 + $0x10] sm:$0xff]  ;;  %v482_v20 = vld [vmem:[%s1251_s4 + $0x18] sm:$0xff] }
   0x7   :  { %825 = vmatpush3.bf16.msra.mxu1 %v908_v3  ;;  %v923_v15 = vld [vmem:[%s1249_s2] sm:$0xff]   ;;  %838 = vmatprep.mubr.bf16.mxu1 %v922_v14  ;;  %v919_v19 = vld [vmem:[%s1247_s0 + $0x30] sm:$0xff]   ;;  %v920_v22 = vld [vmem:[%s1248_s1 + $0x38] sm:$0xff]  }
   0x8   :  { %857 = vmatpush3.bf16.msra.mxu0 %v909_v4  ;;  %826 = vmatprep.subr.bf16.mxu1 %v910_v5  ;;  %v607_v21 = vld [vmem:[%s1252_s5] sm:$0xff]  ;;  %v921_v23 = vld [vmem:[%s1247_s0 + $0x38] sm:$0xff]   ;;  %v608_v24 = vld [vmem:[%s1252_s5 + $0x8] sm:$0xff] }
   0x9   :  { %858 = vmatprep.subr.bf16.mxu0 %v911_v6  ;;  %870 = vmatprep.mubr.bf16.mxu0 %v923_v15  ;;  %v483_v25 = vld [vmem:[%s1251_s4 + $0x20] sm:$0xff]  ;;  %v924_v26 = vld [vmem:[%s1250_s3 + $0x8] sm:$0xff]   ;;  %v926_v28 = vld [vmem:[%s1250_s3 + $0x10] sm:$0xff]  }
   0xa   :  { %507 = vperm.xlu1 %905, %v481_v17   ;;  %502 = vperm.xlu0 %904, %v480_v18   ;;  %v925_v27 = vld [vmem:[%s1249_s2 + $0x8] sm:$0xff]   ;;  %v609_v29 = vld [vmem:[%s1252_s5 + $0x10] sm:$0xff]  ;;  %v610_v32 = vld [vmem:[%s1252_s5 + $0x18] sm:$0xff] }
   0xb   :  { %827 = vmatpush3.bf16.msra.mxu1 %v910_v5  ;;  %v927_v30 = vld [vmem:[%s1249_s2 + $0x10] sm:$0xff]   ;;  %v484_v31 = vld [vmem:[%s1251_s4 + $0x28] sm:$0xff]  ;;  %v928_v34 = vld [vmem:[%s1250_s3 + $0x18] sm:$0xff]  }
   0xc   :  { %859 = vmatpush3.bf16.msra.mxu0 %v911_v6  ;;  %828 = vmatprep.subr.bf16.mxu1 %v912_v7  ;;  %v485_v33 = vld [vmem:[%s1251_s4 + $0x30] sm:$0xff]  ;;  %v929_v35 = vld [vmem:[%s1249_s2 + $0x18] sm:$0xff]   ;;  %v930_v36 = vld [vmem:[%s1250_s3 + $0x20] sm:$0xff]  }
   0xd   :  { %860 = vmatprep.subr.bf16.mxu0 %v913_v8  ;;  %v611_v37 = vld [vmem:[%s1252_s5 + $0x20] sm:$0xff]  ;;  %v486_v39 = vld [vmem:[%s1251_s4 + $0x38] sm:$0xff] }
   0xe   :  { %512 = vperm.xlu1 %905, %v482_v20   ;;  %625 = vperm.xlu0 %904, %v607_v21   ;;  %v931_v38 = vld [vmem:[%s1249_s2 + $0x20] sm:$0xff]  }
   0xf   :  { %829 = vmatpush3.bf16.msra.mxu1 %v912_v7 }
  0x10   :  { %861 = vmatpush3.bf16.msra.mxu0 %v913_v8  ;;  %830 = vmatprep.subr.bf16.mxu1 %v914_v9 }
  0x11   :  { %862 = vmatprep.subr.bf16.mxu0 %v915_v10 }
  0x12   :  { %630 = vperm.xlu1 %905, %v608_v24   ;;  %517 = vperm.xlu0 %904, %v483_v25  }
  0x13   :  { %831 = vmatpush3.bf16.msra.mxu1 %v914_v9 }
  0x14   :  { %863 = vmatpush3.bf16.msra.mxu0 %v915_v10  ;;  %832 = vmatprep.subr.bf16.mxu1 %v916_v11 }
  0x15   :  { %864 = vmatprep.subr.bf16.mxu0 %v917_v12 }
  0x16   :  { %635 = vperm.xlu1 %905, %v609_v29   ;;  %522 = vperm.xlu0 %904, %v484_v31  }
  0x17   :  { %833 = vmatpush3.bf16.msra.mxu1 %v916_v11 }
  0x18   :  { %865 = vmatpush3.bf16.msra.mxu0 %v917_v12  ;;  %834 = vmatprep.subr.bf16.mxu1 %v918_v16 }
  0x19   :  { %866 = vmatprep.subr.bf16.mxu0 %v919_v19 }
  0x1a   :  { %640 = vperm.xlu1 %905, %v610_v32   ;;  %527 = vperm.xlu0 %904, %v485_v33  }
  0x1b   :  { %835 = vmatpush3.bf16.msra.mxu1 %v918_v16 }
  0x1c   :  { %867 = vmatpush3.bf16.msra.mxu0 %v919_v19  ;;  %836 = vmatprep.subr.bf16.mxu1 %v920_v22 }
  0x1d   :  { %868 = vmatprep.subr.bf16.mxu0 %v921_v23 }
  0x1e   :  { %645 = vperm.xlu1 %905, %v611_v37  }
  0x1f   :  { %837 = vmatpush3.bf16.msra.mxu1 %v920_v22 }
  0x20   :  { %869 = vmatpush3.bf16.msra.mxu0 %v921_v23 }
  0x22   :  { %839 = vmatmul.mubr.bf16.vlgmr.msra.gmra.mrb[0].mxu1 %v924_v26 }
  0x23   :  { %871 = vmatmul.mubr.bf16.vlgmr.msra.gmra.mrb[0].mxu0 %v925_v27  ;;  %842 = vmatprep.mubr.bf16.mxu1 %v926_v28 }
  0x24   :  { %874 = vmatprep.mubr.bf16.mxu0 %v927_v30 }
  0x2a   :  { %843 = vmatmul.mubr.bf16.gmra.mrb[4].mxu1 %v928_v34 }
  0x2b   :  { %13 = vsyncpa [#allocation4], 0  ;;  %875 = vmatmul.mubr.bf16.gmra.mrb[4].mxu0 %v929_v35  ;;  %846 = vmatprep.mubr.bf16.mxu1 %v930_v36  ;;  %v612_v40 = vld [vmem:[%s1252_s5 + $0x28] sm:$0xff]  ;;  %v487_v41 = vld [vmem:[%s1251_s4 + $0x40] sm:$0xff]  ;;  %s963_s28 = smov [#allocation3]  }
  0x2c   :  { %878 = vmatprep.mubr.bf16.mxu0 %v931_v38  ;;  %532 = vperm.xlu0 %904, %v486_v39   ;;  %v932_v42 = vld [vmem:[%s1250_s3 + $0x28] sm:$0xff]   ;;  %v934_v44 = vld [vmem:[%s1250_s3 + $0x30] sm:$0xff]   ;;  %v614_v48 = vld [vmem:[%s1252_s5 + $0x38] sm:$0xff]  ;;  %s750_s0 = sshll.u32 %s963_s28, 4  ;;  %s751_s0 = int_to_ptr.vmem [resolvable:$true] %s750_s0 }
  0x2d   :  { %650 = vperm.xlu1 %905, %v612_v40   ;;  %v933_v43 = vld [vmem:[%s1249_s2 + $0x28] sm:$0xff]   ;;  %v613_v45 = vld [vmem:[%s1252_s5 + $0x30] sm:$0xff]  ;;  %v936_v50 = vld [vmem:[%s1250_s3 + $0x38] sm:$0xff]   ;;  %s938_s29 = scalar_lea.vmem %s751_s0, 16  ;;  %s942_s30 = scalar_lea.vmem %s751_s0, 32 }
  0x2e   :  { %v935_v46 = vld [vmem:[%s1249_s2 + $0x30] sm:$0xff]   ;;  %v488_v47 = vld [vmem:[%s1251_s4 + $0x48] sm:$0xff]  ;;  %v937_v51 = vld [vmem:[%s1249_s2 + $0x38] sm:$0xff]   ;;  %p939_p0 = scmp.ne.s32.totalorder %s751_s0, %s938_s29  ;;  %p943_p1 = scmp.lt.s32.totalorder %s751_s0, %s751_s0 }
  0x2f   :  { %v489_v49 = vld [vmem:[%s1251_s4 + $0x50] sm:$0xff]  ;;  %v615_v52 = vld [vmem:[%s1252_s5 + $0x40] sm:$0xff]  ;;  %v490_v53 = vld [vmem:[%s1251_s4 + $0x58] sm:$0xff]  ;;  %p944_p2 = scmp.lt.s32.totalorder %s942_s30, %s938_s29 }
  0x30   :  { %537 = vperm.xlu0 %904, %v487_v41   ;;  %v616_v54 = vld [vmem:[%s1252_s5 + $0x48] sm:$0xff]  ;;  %v491_v55 = vld [vmem:[%s1251_s4 + $0x60] sm:$0xff]  ;;  %v617_v56 = vld [vmem:[%s1252_s5 + $0x50] sm:$0xff] }
  0x31   :  { %655 = vperm.xlu1 %905, %v613_v45   ;;  %v492_v57 = vld [vmem:[%s1251_s4 + $0x68] sm:$0xff]  ;;  %v618_v58 = vld [vmem:[%s1252_s5 + $0x58] sm:$0xff]  ;;  %v493_v59 = vld [vmem:[%s1251_s4 + $0x70] sm:$0xff]  ;;  %p945_p3 = por %p944_p2, %p943_p1 }
  0x32   :  { %847 = vmatmul.mubr.bf16.gmra.mrb[8].mxu1 %v932_v42  ;;  %v619_v60 = vld [vmem:[%s1252_s5 + $0x60] sm:$0xff]  ;;  %v494_v61 = vld [vmem:[%s1251_s4 + $0x78] sm:$0xff]  ;;  %v620_v62 = vld [vmem:[%s1252_s5 + $0x68] sm:$0xff] }
  0x33   :  { %879 = vmatmul.mubr.bf16.gmra.mrb[8].mxu0 %v933_v43  ;;  %850 = vmatprep.mubr.bf16.mxu1 %v934_v44  ;;  %v621_v63 = vld [vmem:[%s1252_s5 + $0x70] sm:$0xff]  ;;  %v622_v0 = vld [vmem:[%s1252_s5 + $0x78] sm:$0xff]  ;;  %p946_p4 = pnand %p945_p3, %p939_p0 }
  0x34   :  { %882 = vmatprep.mubr.bf16.mxu0 %v935_v46  ;;  %542 = vperm.xlu0 %904, %v488_v47  }
  0x35   :  { %660 = vperm.xlu1 %905, %v614_v48  }
  0x38   :  { %547 = vperm.xlu0 %904, %v489_v49  }
  0x39   :  { %665 = vperm.xlu1 %905, %v615_v52  }
  0x3a   :  { %851 = vmatmul.mubr.bf16.gmra.mrb[12].mxu1 %v936_v50 }
  0x3b   :  { %883 = vmatmul.mubr.bf16.gmra.mrb[12].mxu0 %v937_v51 }
  0x3c   :  { %552 = vperm.xlu0 %904, %v490_v53  }
  0x3d   :  { %670 = vperm.xlu1 %905, %v616_v54  }
  0x40   :  { %557 = vperm.xlu0 %904, %v491_v55  }
  0x41   :  { %675 = vperm.xlu1 %905, %v617_v56  }
  0x44   :  { %562 = vperm.xlu0 %904, %v492_v57  }
  0x45   :  { %680 = vperm.xlu1 %905, %v618_v58  }
  0x48   :  { %567 = vperm.xlu0 %904, %v493_v59  }
  0x49   :  { %685 = vperm.xlu1 %905, %v619_v60  }
  0x4c   :  { %572 = vperm.xlu0 %904, %v494_v61  }
  0x4d   :  { %690 = vperm.xlu1 %905, %v620_v62  }
  0x50   :  { %695 = vperm.xlu0 %904, %v621_v63  }
  0x51   :  { %700 = vperm.xlu1 %905, %v622_v0  }
  0x85   :  { %v498_v1 = vpop.permute.xlu0 %497 }
  0x89   :  { %v508_v2 = vpop.permute.xlu1 %507  ;;  %v503_v3 = vpop.permute.xlu0 %502 }
  0x8d   :  { %v513_v4 = vpop.permute.xlu1 %512  ;;  %v626_v5 = vpop.permute.xlu0 %625 }
  0x91   :  { %v631_v6 = vpop.permute.xlu1 %630  ;;  %v518_v7 = vpop.permute.xlu0 %517 }
  0x95   :  { %v636_v8 = vpop.permute.xlu1 %635  ;;  %v523_v9 = vpop.permute.xlu0 %522 }
  0x99   :  { %v641_v10 = vpop.permute.xlu1 %640  ;;  %v528_v11 = vpop.permute.xlu0 %527 }
  0x9d   :  { %v646_v12 = vpop.permute.xlu1 %645 }
  0xab   :  { %v533_v13 = vpop.permute.xlu0 %532 }
  0xac   :  { %v1196_v14 = vpop.permute.xlu1 %650 }
  0xaf   :  { %v1198_v15 = vpop.permute.xlu0 %537 }
  0xb0   :  { %v1200_v16 = vpop.permute.xlu1 %655 }
  0xb3   :  { %v1202_v17 = vpop.permute.xlu0 %542 }
  0xb4   :  { %v1204_v18 = vpop.permute.xlu1 %660 }
  0xb7   :  { %v1206_v19 = vpop.permute.xlu0 %547 }
  0xb8   :  { %v1208_v20 = vpop.permute.xlu1 %665 }
  0xbb   :  { %v1210_v21 = vpop.permute.xlu0 %552 }
  0xbc   :  { %v1212_v22 = vpop.permute.xlu1 %670 }
  0xbf   :  { %v1214_v38 = vpop.permute.xlu0 %557 }
  0xc0   :  { %v1216_v41 = vpop.permute.xlu1 %675 }
  0xc3   :  { %v1218_v0 = vpop.permute.xlu0 %562 }
  0xf5   :  { %v840_v23 = vpop.f32.mrb[0].mxu1 }
  0xf6   :  { %v872_v24 = vpop.f32.mrb[0].mxu0  ;;  %v223_v25 = vpop.f32.mrb[1].mxu1 }
  0xf7   :  { %v425_v26 = vadd.f32 %v872_v24, %v840_v23  ;;  %v416_v27 = vpop.f32.mrb[1].mxu0  ;;  %v841_v28 = vpop.f32.mrb[2].mxu1 }
  0xf8   :  { %v417_v29 = vadd.f32 %v416_v27, %v223_v25  ;;  %v873_v30 = vpop.f32.mrb[2].mxu0  ;;  %v226_v31 = vpop.f32.mrb[3].mxu1 }
  0xf9   :  { %v577_v32 = vadd.f32 %v508_v2, %v425_v26  ;;  %v428_v33 = vadd.f32 %v873_v30, %v841_v28  ;;  %v419_v34 = vpop.f32.mrb[3].mxu0  ;;  %v681_v23 = vpop.permute.xlu1 %680 }
  0xfa   :  { %v575_v35 = vadd.f32 %v498_v1, %v417_v29  ;;  %v420_v36 = vadd.f32 %v419_v34, %v226_v31 }
  0xfb   :  { %v578_v37 = vadd.f32 %v513_v4, %v428_v33  ;;  %v593_v42 = vmax.f32 %v577_v32, 0.0 }
  0xfc   :  { %v591_v39 = vmax.f32 %v575_v35, 0.0  ;;  %v576_v40 = vadd.f32 %v503_v3, %v420_v36 }
  0xfd   :  { %v844_v43 = vpop.f32.mrb[4].mxu1  ;;  %v594_v47 = vmax.f32 %v578_v37, 0.0  ;;  %v705_v56 = vmul.f32 %v636_v8, %v593_v42 }
  0xfe   :  { %v592_v44 = vmax.f32 %v576_v40, 0.0  ;;  %v876_v45 = vpop.f32.mrb[4].mxu0  ;;  %v239_v46 = vpop.f32.mrb[5].mxu1  ;;  %v703_v51 = vmul.f32 %v626_v5, %v591_v39 }
  0xff   :  { %v441_v48 = vadd.f32 %v876_v45, %v844_v43  ;;  %v432_v49 = vpop.f32.mrb[5].mxu0  ;;  %v845_v50 = vpop.f32.mrb[6].mxu1  ;;  %v706_v63 = vmul.f32 %v641_v10, %v594_v47 }
 0x100   :  { %v704_v52 = vmul.f32 %v631_v6, %v592_v44  ;;  %v433_v53 = vadd.f32 %v432_v49, %v239_v46  ;;  %v877_v54 = vpop.f32.mrb[6].mxu0  ;;  %v242_v55 = vpop.f32.mrb[7].mxu1 }
 0x101   :  { %v444_v57 = vadd.f32 %v877_v54, %v845_v50  ;;  %v435_v58 = vpop.f32.mrb[7].mxu0  ;;  %v581_v60 = vadd.f32 %v528_v11, %v441_v48  ;;  %v568_v40 = vpop.permute.xlu0 %567 }
 0x102   :  { %v719_v59 = vadd.f32 %v704_v52, %v703_v51  ;;  %v579_v61 = vadd.f32 %v518_v7, %v433_v53  ;;  %v436_v62 = vadd.f32 %v435_v58, %v242_v55  ;;  %v686_v45 = vpop.permute.xlu1 %685 }
 0x103   :  { %v582_v3 = vadd.f32 %v533_v13, %v444_v57  ;;  %v597_v6 = vmax.f32 %v581_v60, 0.0 }
 0x104   :  { %v720_v1 = vadd.f32 %v719_v59, %v705_v56  ;;  %v595_v2 = vmax.f32 %v579_v61, 0.0  ;;  %v580_v4 = vadd.f32 %v523_v9, %v436_v62 }
 0x105   :  { %v848_v5 = vpop.f32.mrb[8].mxu1  ;;  %v598_v30 = vmax.f32 %v582_v3, 0.0  ;;  %v573_v62 = vpop.permute.xlu0 %572 }
 0x106   :  { %v707_v24 = vmul.f32 %v646_v12, %v595_v2  ;;  %v721_v25 = vadd.f32 %v720_v1, %v706_v63  ;;  %v596_v26 = vmax.f32 %v580_v4, 0.0  ;;  %v880_v8 = vpop.f32.mrb[8].mxu0  ;;  %v255_v27 = vpop.f32.mrb[9].mxu1  ;;  %v709_v12 = vmul.f32 %v1200_v16, %v597_v6 }
 0x107   :  { %v457_v28 = vadd.f32 %v880_v8, %v848_v5  ;;  %v448_v29 = vpop.f32.mrb[9].mxu0  ;;  %v849_v11 = vpop.f32.mrb[10].mxu1  ;;  %v710_v42 = vmul.f32 %v1204_v18, %v598_v30 }
 0x108   :  { %v722_v7 = vadd.f32 %v721_v25, %v707_v24  ;;  %v708_v10 = vmul.f32 %v1196_v14, %v596_v26  ;;  %v449_v31 = vadd.f32 %v448_v29, %v255_v27  ;;  %v881_v32 = vpop.f32.mrb[10].mxu0  ;;  %v258_v33 = vpop.f32.mrb[11].mxu1 }
 0x109   :  { %v585_v9 = vadd.f32 %v1206_v19, %v457_v28  ;;  %v460_v13 = vadd.f32 %v881_v32, %v849_v11  ;;  %v451_v34 = vpop.f32.mrb[11].mxu0  ;;  %v696_v27 = vpop.permute.xlu0 %695 }
 0x10a   :  { %v723_v35 = vadd.f32 %v722_v7, %v708_v10  ;;  %v583_v36 = vadd.f32 %v1198_v15, %v449_v31  ;;  %v452_v37 = vadd.f32 %v451_v34, %v258_v33  ;;  %v741_v33 = vstv %s1253_s6 }
 0x10b   :  { %v586_v39 = vadd.f32 %v1210_v21, %v460_v13  ;;  %v601_v46 = vmax.f32 %v585_v9, 0.0 }
 0x10c   :  { %v724_v43 = vadd.f32 %v723_v35, %v709_v12  ;;  %v599_v14 = vmax.f32 %v583_v36, 0.0  ;;  %v584_v44 = vadd.f32 %v1202_v17, %v452_v37 }
 0x10d   :  { %v852_v19 = vpop.f32.mrb[12].mxu1  ;;  %v602_v15 = vmax.f32 %v586_v39, 0.0  ;;  %v713_v17 = vmul.f32 %v1216_v41, %v601_v46 }
 0x10e   :  { %v711_v47 = vmul.f32 %v1208_v20, %v599_v14  ;;  %v725_v48 = vadd.f32 %v724_v43, %v710_v42  ;;  %v600_v16 = vmax.f32 %v584_v44, 0.0  ;;  %v884_v49 = vpop.f32.mrb[12].mxu0  ;;  %v271_v50 = vpop.f32.mrb[13].mxu1 }
 0x10f   :  { %v473_v51 = vadd.f32 %v884_v49, %v852_v19  ;;  %v464_v52 = vpop.f32.mrb[13].mxu0  ;;  %v853_v21 = vpop.f32.mrb[14].mxu1  ;;  %v714_v63 = vmul.f32 %v681_v23, %v602_v15 }
 0x110   :  { %v726_v53 = vadd.f32 %v725_v48, %v711_v47  ;;  %v712_v18 = vmul.f32 %v1212_v22, %v600_v16  ;;  %v465_v54 = vadd.f32 %v464_v52, %v271_v50  ;;  %v885_v55 = vpop.f32.mrb[14].mxu0  ;;  %v274_v56 = vpop.f32.mrb[15].mxu1 }
 0x111   :  { %v476_v57 = vadd.f32 %v885_v55, %v853_v21  ;;  %v467_v58 = vpop.f32.mrb[15].mxu0  ;;  %v589_v20 = vadd.f32 %v568_v40, %v473_v51  ;;  %v691_v22 = vpop.permute.xlu1 %690 }
 0x112   :  { %v727_v59 = vadd.f32 %v726_v53, %v712_v18  ;;  %v587_v60 = vadd.f32 %v1214_v38, %v465_v54  ;;  %v468_v61 = vadd.f32 %v467_v58, %v274_v56 }
 0x113   :  { %v590_v3 = vadd.f32 %v573_v62, %v476_v57  ;;  %v605_v5 = vmax.f32 %v589_v20, 0.0 }
 0x114   :  { %v728_v1 = vadd.f32 %v727_v59, %v713_v17  ;;  %v603_v2 = vmax.f32 %v587_v60, 0.0  ;;  %v588_v4 = vadd.f32 %v1218_v0, %v468_v61 }
 0x115   :  { %v606_v26 = vmax.f32 %v590_v3, 0.0  ;;  %v717_v28 = vmul.f32 %v696_v27, %v605_v5  ;;  %v701_v38 = vpop.permute.xlu1 %700 }
 0x116   :  { %v715_v6 = vmul.f32 %v686_v45, %v603_v2  ;;  %v729_v24 = vadd.f32 %v728_v1, %v714_v63  ;;  %v604_v25 = vmax.f32 %v588_v4, 0.0 }
 0x117   :  { %v718_v11 = vmul.f32 %v701_v38, %v606_v26 }
 0x118   :  { %v730_v41 = vadd.f32 %v729_v24, %v715_v6  ;;  %v716_v8 = vmul.f32 %v691_v22, %v604_v25 }
 0x11a   :  { %v731_v29 = vadd.f32 %v730_v41, %v716_v8 }
 0x11c   :  { %v732_v7 = vadd.f32 %v731_v29, %v717_v28 }
 0x11e   :  { %v733_v23 = vadd.f32 %v732_v7, %v718_v11 }
 0x120   :  { %v734_v30 = vrot.slane %v733_v23, 4 }
 0x122   :  { %v735_v10 = vadd.f32 %v734_v30, %v733_v23 }
 0x124   :  { %v736_v31 = vrot.slane %v735_v10, 2 }
 0x126   :  { %v737_v32 = vadd.f32 %v736_v31, %v735_v10 }
 0x128   :  { %v738_v0 = vrot.slane %v737_v32, 1 }
 0x12a   :  { %v739_v9 = vadd.f32 %v738_v0, %v737_v32 }
 0x12c   :  { %v742_v13 = vadd.f32 %v741_v33, %v739_v9 }
 0x12e   :  { %743 = vst [vmem:[#allocation3] sm:$0x1] %v742_v13 }
 0x12f   :  { %949 = shalt.err (!%p946_p4)
}
 0x130   :  { %s950_s10 = scalar_lea.hbm %s1254_s7, 16 }
 0x131   :  { %p951_p5 = scmp.ne.s32.totalorder %s1254_s7, %s950_s10  ;;  %p954_p6 = scmp.lt.u32.totalorder %s950_s10, %s1254_s7 }
 0x133   :  { %p956_p7 = pnand %p954_p6, %p951_p5 }
 0x135   :  { %959 = shalt.err (!%p956_p7)
}
 0x136   :  { %753 = dma.vmem_to_hbm [thread:$0]  %s751_s0, 16, %s1254_s7, [#allocation4]  }
 0x137   :  { %960 = dma.done.wait [#allocation4], 16  }
 0x138   :  { %961 = vsyncadd [#allocation4], 4294967280 }
 0x139   :  { %757 = vsyncpa [#allocation4], 1 }

</bundles_post_ra>
